<compile_context>
chip_gen: v7x
topology: tpu7x:2x2x1
jax: 0.10.0
libtpu: 0.0.40
codegen_flags: <defaults>
</compile_context>

<pallas_src>
import math

import jax
import jax.numpy as jnp
from jax.experimental import pallas as pl
from jax.experimental.pallas import tpu as pltpu


def _make_conv_kernel(kd, kh, H, pad, PAD, DH):
    """Builds the per-batch-element conv kernel (static shape parameters)."""

    def kernel(x_ref, w_ref, hmask_ref, y_ref, stat_ref):
        # x_ref    : (DH + 2*PAD, W*Cin)        bf16  depth-flattened, padded
        # w_ref    : (kd, kh, W*Cin, W*CoutP)   bf16  banded weights
        # hmask_ref: (kh, DH, W*Cin)            bf16  height-tap row masks
        # y_ref    : (DH, W*CoutP)              bf16  conv output slab
        # stat_ref : (2, W*CoutP)               f32   per-n channel sum / sumsq
        acc = None
        for a in range(kd):                    # static depth tap (unrolled)
            for b in range(kh):                # static height tap (unrolled)
                start = PAD + (a - pad) * H + (b - pad)
                lhs = x_ref[start:start + DH, :]          # (DH, W*Cin)
                if b != pad:
                    # zero rows whose height tap crosses a plane boundary
                    lhs = lhs * hmask_ref[b]
                t = jnp.dot(lhs, w_ref[a, b],
                            preferred_element_type=jnp.float32)
                acc = t if acc is None else acc + t       # (DH, W*CoutP) f32
        y_ref[...] = acc.astype(y_ref.dtype)
        stat_ref[0:1, :] = jnp.sum(acc, axis=0, keepdims=True)
        stat_ref[1:2, :] = jnp.sum(acc * acc, axis=0, keepdims=True)

    return kernel


def _bn_relu_kernel(y_ref, scale_ref, shift_ref, o_ref):
    """Fused folded-BatchNorm affine + ReLU on a lane-dense 2-D slab."""
    y = y_ref[...].astype(jnp.float32)                    # (DH, W*CoutP)
    o = jnp.maximum(y * scale_ref[...] + shift_ref[...], 0.0)
    o_ref[...] = o.astype(o_ref.dtype)


def basic_conv3d(x_ncdhw, weight, gamma, beta, *, padding=1, eps=1e-5):
    """Forward of BasicConv3d.

    x_ncdhw: (N, Cin, D, H, W)        PyTorch layout
    weight : (Cout, Cin, kd, kh, kw)  PyTorch Conv3d weight (bias=False)
    gamma, beta: (Cout,)              BatchNorm3d affine parameters
    returns: (N, Cout, D, H, W) float32
    """
    N, Cin, D, H, W = x_ncdhw.shape
    Cout, Cin_w, kd, kh, kw = weight.shape
    assert Cin_w == Cin
    # This implementation assumes stride=1 "same" padding (the chosen config).
    assert kd == kh == kw and padding == (kd - 1) // 2

    # ---- pad Cout so the lane dimension W*CoutP is a multiple of 128 --------
    q = 128 // math.gcd(W, 128)
    CoutP = -(-Cout // q) * q
    if CoutP > 4 * Cout and (W * Cout) % 128 != 0:
        CoutP = Cout          # accept masked stores rather than >4x padding
    WCin, WCoutP = W * Cin, W * CoutP

    DH = D * H
    # Zero rows at front/back of the depth-flattened slab: the depth halo is
    # read from the zero pad, so every tap is one contiguous static slice.
    PAD = -(-(padding * (H + 1)) // 8) * 8
    DHP = DH + 2 * PAD

    # ---- lane-dense input layout: (N, D*H (+pad), W*Cin) bf16 ---------------
    x = jnp.transpose(x_ncdhw, (0, 2, 3, 4, 1))            # (N, D, H, W, Cin)
    x = x.reshape(N, DH, WCin).astype(jnp.bfloat16)
    x = jnp.pad(x, ((0, 0), (PAD, PAD), (0, 0)))           # (N, DHP, WCin)

    # ---- banded weights: fold kw taps + Cin contraction + W halo into one
    #      (W*Cin, W*CoutP) matmul per (kd, kh) tap ---------------------------
    wt = jnp.transpose(weight, (2, 3, 4, 1, 0)).astype(jnp.float32)  # (kd,kh,kw,Cin,Cout)
    wt = jnp.pad(wt, ((0, 0),) * 4 + ((0, CoutP - Cout),))           # pad Cout
    wi = jnp.arange(W)[:, None]
    wo = jnp.arange(W)[None, :]
    c = wi - wo + padding
    valid = (c >= 0) & (c < kw)
    band = wt[:, :, jnp.clip(c, 0, kw - 1)]                # (kd,kh,W,W,Cin,CoutP)
    band = band * valid[None, None, :, :, None, None]
    band = jnp.transpose(band, (0, 1, 2, 4, 3, 5)).reshape(kd, kh, WCin, WCoutP)
    band = band.astype(jnp.bfloat16)

    # ---- per-height-tap row masks (constant, tiny) --------------------------
    hh = jnp.arange(DH) % H
    hvalid = jnp.stack([(hh + b - padding >= 0) & (hh + b - padding < H)
                        for b in range(kh)], axis=0)       # (kh, DH)
    hmask = jnp.broadcast_to(hvalid[:, :, None],
                             (kh, DH, WCin)).astype(jnp.bfloat16)

    conv_kernel = _make_conv_kernel(kd, kh, H, padding, PAD, DH)
    y, pstat = pl.pallas_call(
        conv_kernel,
        grid=(N,),
        in_specs=[
            pl.BlockSpec((None, DHP, WCin), lambda n: (n, 0, 0)),
            pl.BlockSpec((kd, kh, WCin, WCoutP), lambda n: (0, 0, 0, 0)),
            pl.BlockSpec((kh, DH, WCin), lambda n: (0, 0, 0)),
        ],
        out_specs=[
            pl.BlockSpec((None, DH, WCoutP), lambda n: (n, 0, 0)),
            pl.BlockSpec((None, 2, WCoutP), lambda n: (n, 0, 0)),
        ],
        out_shape=[
            jax.ShapeDtypeStruct((N, DH, WCoutP), jnp.bfloat16),
            jax.ShapeDtypeStruct((N, 2, WCoutP), jnp.float32),
        ],
        compiler_params=pltpu.CompilerParams(
            dimension_semantics=("parallel",),
            vmem_limit_bytes=32 * 1024 * 1024),
    )(x, band, hmask)

    # ---- BatchNorm3d training-mode statistics (biased variance) -------------
    count = float(N * D * H * W)
    ch = pstat.reshape(N, 2, W, CoutP).sum(axis=(0, 2))    # (2, CoutP)
    mean = ch[0] / count
    # TODO(synk): E[x^2]-E[x]^2 in f32 can cancel for large-mean activations;
    # a mean-subtracted second pass is safer for production.
    var = ch[1] / count - mean * mean
    gamma_p = jnp.pad(gamma.astype(jnp.float32), (0, CoutP - Cout))
    beta_p = jnp.pad(beta.astype(jnp.float32), (0, CoutP - Cout))
    scale = gamma_p * jax.lax.rsqrt(var + eps)             # padded ch: gamma=0
    shift = beta_p - mean * scale
    scale_row = jnp.tile(scale, W).reshape(1, WCoutP)      # lane = w*CoutP + c
    shift_row = jnp.tile(shift, W).reshape(1, WCoutP)

    out_flat = pl.pallas_call(
        _bn_relu_kernel,
        grid=(N,),
        in_specs=[
            pl.BlockSpec((None, DH, WCoutP), lambda n: (n, 0, 0)),
            pl.BlockSpec((1, WCoutP), lambda n: (0, 0)),
            pl.BlockSpec((1, WCoutP), lambda n: (0, 0)),
        ],
        out_specs=pl.BlockSpec((None, DH, WCoutP), lambda n: (n, 0, 0)),
        out_shape=jax.ShapeDtypeStruct((N, DH, WCoutP), jnp.float32),
        compiler_params=pltpu.CompilerParams(
            dimension_semantics=("parallel",)),
    )(y, scale_row, shift_row)

    out = out_flat.reshape(N, D, H, W, CoutP)[..., :Cout]
    # NOTE(perf): keeping NDHWC (and folding this permute into the consumer)
    # would save a full HBM read+write; kept to match the PyTorch module API.
    return jnp.transpose(out, (0, 4, 1, 2, 3))             # back to NCDHW


def _reference(x_ncdhw, weight, gamma, beta, *, padding=1, eps=1e-5):
    """Pure-JAX f32 reference matching PyTorch training-mode forward."""
    x = jnp.transpose(x_ncdhw, (0, 2, 3, 4, 1)).astype(jnp.float32)
    wk = jnp.transpose(weight, (2, 3, 4, 1, 0)).astype(jnp.float32)
    y = jax.lax.conv_general_dilated(
        x, wk, window_strides=(1, 1, 1),
        padding=[(padding, padding)] * 3,
        dimension_numbers=("NDHWC", "DHWIO", "NDHWC"),
        precision=jax.lax.Precision.HIGHEST)
    mean = jnp.mean(y, axis=(0, 1, 2, 3))
    var = jnp.var(y, axis=(0, 1, 2, 3))            # biased, like BN normalization
    yn = (y - mean) * (gamma * jax.lax.rsqrt(var + eps)) + beta
    out = jnp.maximum(yn, 0.0)
    return jnp.transpose(out, (0, 4, 1, 2, 3))


if __name__ == "__main__":
    key = jax.random.PRNGKey(0)
    k1, k2, k3, k4 = jax.random.split(key, 4)

    N, Cin, Cout, D, H, W = 2, 4, 8, 8, 8, 8
    KS = 3  # kernel_size (stride=1, padding=1)

    x = jax.random.normal(k1, (N, Cin, D, H, W), dtype=jnp.float32)
    weight = 0.1 * jax.random.normal(k2, (Cout, Cin, KS, KS, KS), dtype=jnp.float32)
    gamma = 1.0 + 0.1 * jax.random.normal(k3, (Cout,), dtype=jnp.float32)
    beta = 0.1 * jax.random.normal(k4, (Cout,), dtype=jnp.float32)

    out = basic_conv3d(x, weight, gamma, beta, padding=1)
    out = jax.block_until_ready(out)

    ref = _reference(x, weight, gamma, beta, padding=1)
    assert out.shape == (N, Cout, D, H, W)
    # bf16 inputs/weights and bf16 conv-output storage (f32 accumulation/stats)
    # -> slightly looser tolerance than a pure-f32 pipeline.
    if not jnp.allclose(out, ref, atol=2e-2, rtol=2e-2):
        err = float(jnp.max(jnp.abs(out - ref)))
        raise AssertionError(f"Pallas output mismatch vs JAX reference (max abs err {err})")

    print("KERNEL_OK")
</pallas_src>

<mosaic_0001>
module attributes {stable_mosaic.version = 11 : i64} {
  func.func @kernel(%arg0: i32, %arg1: memref<1x96x32xbf16, #tpu.memory_space<vmem>>, %arg2: memref<3x3x32x128xbf16, #tpu.memory_space<vmem>>, %arg3: memref<3x64x32xbf16, #tpu.memory_space<vmem>>, %arg4: memref<1x64x128xbf16, #tpu.memory_space<vmem>>, %arg5: memref<1x2x128xf32, #tpu.memory_space<vmem>>) attributes {dimension_semantics = [#tpu.dimension_semantics<parallel>], iteration_bounds = array<i64: 2>, scalar_prefetch = 0 : i64, scratch_operands = 0 : i64, tpu.core_type = #tpu.core_type<tc>, window_params = [{transform_indices = @transform_0, window_bounds = array<i64: 1, 96, 32>}, {pipeline_mode = #tpu.pipeline_mode<synchronous>, transform_indices = @transform_1, window_bounds = array<i64: 3, 3, 32, 128>}, {pipeline_mode = #tpu.pipeline_mode<synchronous>, transform_indices = @transform_2, window_bounds = array<i64: 3, 64, 32>}, {transform_indices = @transform_3, window_bounds = array<i64: 1, 64, 128>}, {transform_indices = @transform_4, window_bounds = array<i64: 1, 2, 128>}]} {
    %c0 = arith.constant 0 : index
    %c7 = arith.constant 7 : index
    %c0_0 = arith.constant 0 : index
    %0 = vector.load %arg1[%c0, %c7, %c0_0] : memref<1x96x32xbf16, #tpu.memory_space<vmem>>, vector<1x64x32xbf16>
    %1 = vector.shape_cast %0 : vector<1x64x32xbf16> to vector<64x32xbf16>
    %c0_1 = arith.constant 0 : index
    %c0_2 = arith.constant 0 : index
    %c0_3 = arith.constant 0 : index
    %2 = vector.load %arg3[%c0_1, %c0_2, %c0_3] : memref<3x64x32xbf16, #tpu.memory_space<vmem>>, vector<1x64x32xbf16>
    %3 = vector.shape_cast %2 : vector<1x64x32xbf16> to vector<64x32xbf16>
    %4 = arith.mulf %1, %3 : vector<64x32xbf16>
    %c0_4 = arith.constant 0 : index
    %c0_5 = arith.constant 0 : index
    %c0_6 = arith.constant 0 : index
    %c0_7 = arith.constant 0 : index
    %5 = vector.load %arg2[%c0_4, %c0_5, %c0_6, %c0_7] : memref<3x3x32x128xbf16, #tpu.memory_space<vmem>>, vector<1x1x32x128xbf16>
    %6 = vector.shape_cast %5 : vector<1x1x32x128xbf16> to vector<32x128xbf16>
    %cst = arith.constant dense<0.000000e+00> : vector<64x128xf32>
    %7 = tpu.matmul %4, %6, %cst {dimension_numbers = #tpu.dot_dimension_numbers<[1], [0], [0], [1], [0, 0, 1, 1], [], []>} : vector<64x32xbf16>, vector<32x128xbf16>, vector<64x128xf32> -> vector<64x128xf32>
    %c0_8 = arith.constant 0 : index
    %c8 = arith.constant 8 : index
    %c0_9 = arith.constant 0 : index
    %8 = vector.load %arg1[%c0_8, %c8, %c0_9] : memref<1x96x32xbf16, #tpu.memory_space<vmem>>, vector<1x64x32xbf16>
    %9 = vector.shape_cast %8 : vector<1x64x32xbf16> to vector<64x32xbf16>
    %c0_10 = arith.constant 0 : index
    %c1 = arith.constant 1 : index
    %c0_11 = arith.constant 0 : index
    %c0_12 = arith.constant 0 : index
    %10 = vector.load %arg2[%c0_10, %c1, %c0_11, %c0_12] : memref<3x3x32x128xbf16, #tpu.memory_space<vmem>>, vector<1x1x32x128xbf16>
    %11 = vector.shape_cast %10 : vector<1x1x32x128xbf16> to vector<32x128xbf16>
    %cst_13 = arith.constant dense<0.000000e+00> : vector<64x128xf32>
    %12 = tpu.matmul %9, %11, %cst_13 {dimension_numbers = #tpu.dot_dimension_numbers<[1], [0], [0], [1], [0, 0, 1, 1], [], []>} : vector<64x32xbf16>, vector<32x128xbf16>, vector<64x128xf32> -> vector<64x128xf32>
    %13 = arith.addf %7, %12 : vector<64x128xf32>
    %c0_14 = arith.constant 0 : index
    %c9 = arith.constant 9 : index
    %c0_15 = arith.constant 0 : index
    %14 = vector.load %arg1[%c0_14, %c9, %c0_15] : memref<1x96x32xbf16, #tpu.memory_space<vmem>>, vector<1x64x32xbf16>
    %15 = vector.shape_cast %14 : vector<1x64x32xbf16> to vector<64x32xbf16>
    %c2 = arith.constant 2 : index
    %c0_16 = arith.constant 0 : index
    %c0_17 = arith.constant 0 : index
    %16 = vector.load %arg3[%c2, %c0_16, %c0_17] : memref<3x64x32xbf16, #tpu.memory_space<vmem>>, vector<1x64x32xbf16>
    %17 = vector.shape_cast %16 : vector<1x64x32xbf16> to vector<64x32xbf16>
    %18 = arith.mulf %15, %17 : vector<64x32xbf16>
    %c0_18 = arith.constant 0 : index
    %c2_19 = arith.constant 2 : index
    %c0_20 = arith.constant 0 : index
    %c0_21 = arith.constant 0 : index
    %19 = vector.load %arg2[%c0_18, %c2_19, %c0_20, %c0_21] : memref<3x3x32x128xbf16, #tpu.memory_space<vmem>>, vector<1x1x32x128xbf16>
    %20 = vector.shape_cast %19 : vector<1x1x32x128xbf16> to vector<32x128xbf16>
    %cst_22 = arith.constant dense<0.000000e+00> : vector<64x128xf32>
    %21 = tpu.matmul %18, %20, %cst_22 {dimension_numbers = #tpu.dot_dimension_numbers<[1], [0], [0], [1], [0, 0, 1, 1], [], []>} : vector<64x32xbf16>, vector<32x128xbf16>, vector<64x128xf32> -> vector<64x128xf32>
    %22 = arith.addf %13, %21 : vector<64x128xf32>
    %c0_23 = arith.constant 0 : index
    %c15 = arith.constant 15 : index
    %c0_24 = arith.constant 0 : index
    %23 = vector.load %arg1[%c0_23, %c15, %c0_24] : memref<1x96x32xbf16, #tpu.memory_space<vmem>>, vector<1x64x32xbf16>
    %24 = vector.shape_cast %23 : vector<1x64x32xbf16> to vector<64x32xbf16>
    %c0_25 = arith.constant 0 : index
    %c0_26 = arith.constant 0 : index
    %c0_27 = arith.constant 0 : index
    %25 = vector.load %arg3[%c0_25, %c0_26, %c0_27] : memref<3x64x32xbf16, #tpu.memory_space<vmem>>, vector<1x64x32xbf16>
    %26 = vector.shape_cast %25 : vector<1x64x32xbf16> to vector<64x32xbf16>
    %27 = arith.mulf %24, %26 : vector<64x32xbf16>
    %c1_28 = arith.constant 1 : index
    %c0_29 = arith.constant 0 : index
    %c0_30 = arith.constant 0 : index
    %c0_31 = arith.constant 0 : index
    %28 = vector.load %arg2[%c1_28, %c0_29, %c0_30, %c0_31] : memref<3x3x32x128xbf16, #tpu.memory_space<vmem>>, vector<1x1x32x128xbf16>
    %29 = vector.shape_cast %28 : vector<1x1x32x128xbf16> to vector<32x128xbf16>
    %cst_32 = arith.constant dense<0.000000e+00> : vector<64x128xf32>
    %30 = tpu.matmul %27, %29, %cst_32 {dimension_numbers = #tpu.dot_dimension_numbers<[1], [0], [0], [1], [0, 0, 1, 1], [], []>} : vector<64x32xbf16>, vector<32x128xbf16>, vector<64x128xf32> -> vector<64x128xf32>
    %31 = arith.addf %22, %30 : vector<64x128xf32>
    %c0_33 = arith.constant 0 : index
    %c16 = arith.constant 16 : index
    %c0_34 = arith.constant 0 : index
    %32 = vector.load %arg1[%c0_33, %c16, %c0_34] : memref<1x96x32xbf16, #tpu.memory_space<vmem>>, vector<1x64x32xbf16>
    %33 = vector.shape_cast %32 : vector<1x64x32xbf16> to vector<64x32xbf16>
    %c1_35 = arith.constant 1 : index
    %c1_36 = arith.constant 1 : index
    %c0_37 = arith.constant 0 : index
    %c0_38 = arith.constant 0 : index
    %34 = vector.load %arg2[%c1_35, %c1_36, %c0_37, %c0_38] : memref<3x3x32x128xbf16, #tpu.memory_space<vmem>>, vector<1x1x32x128xbf16>
    %35 = vector.shape_cast %34 : vector<1x1x32x128xbf16> to vector<32x128xbf16>
    %cst_39 = arith.constant dense<0.000000e+00> : vector<64x128xf32>
    %36 = tpu.matmul %33, %35, %cst_39 {dimension_numbers = #tpu.dot_dimension_numbers<[1], [0], [0], [1], [0, 0, 1, 1], [], []>} : vector<64x32xbf16>, vector<32x128xbf16>, vector<64x128xf32> -> vector<64x128xf32>
    %37 = arith.addf %31, %36 : vector<64x128xf32>
    %c0_40 = arith.constant 0 : index
    %c17 = arith.constant 17 : index
    %c0_41 = arith.constant 0 : index
    %38 = vector.load %arg1[%c0_40, %c17, %c0_41] : memref<1x96x32xbf16, #tpu.memory_space<vmem>>, vector<1x64x32xbf16>
    %39 = vector.shape_cast %38 : vector<1x64x32xbf16> to vector<64x32xbf16>
    %c2_42 = arith.constant 2 : index
    %c0_43 = arith.constant 0 : index
    %c0_44 = arith.constant 0 : index
    %40 = vector.load %arg3[%c2_42, %c0_43, %c0_44] : memref<3x64x32xbf16, #tpu.memory_space<vmem>>, vector<1x64x32xbf16>
    %41 = vector.shape_cast %40 : vector<1x64x32xbf16> to vector<64x32xbf16>
    %42 = arith.mulf %39, %41 : vector<64x32xbf16>
    %c1_45 = arith.constant 1 : index
    %c2_46 = arith.constant 2 : index
    %c0_47 = arith.constant 0 : index
    %c0_48 = arith.constant 0 : index
    %43 = vector.load %arg2[%c1_45, %c2_46, %c0_47, %c0_48] : memref<3x3x32x128xbf16, #tpu.memory_space<vmem>>, vector<1x1x32x128xbf16>
    %44 = vector.shape_cast %43 : vector<1x1x32x128xbf16> to vector<32x128xbf16>
    %cst_49 = arith.constant dense<0.000000e+00> : vector<64x128xf32>
    %45 = tpu.matmul %42, %44, %cst_49 {dimension_numbers = #tpu.dot_dimension_numbers<[1], [0], [0], [1], [0, 0, 1, 1], [], []>} : vector<64x32xbf16>, vector<32x128xbf16>, vector<64x128xf32> -> vector<64x128xf32>
    %46 = arith.addf %37, %45 : vector<64x128xf32>
    %c0_50 = arith.constant 0 : index
    %c23 = arith.constant 23 : index
    %c0_51 = arith.constant 0 : index
    %47 = vector.load %arg1[%c0_50, %c23, %c0_51] : memref<1x96x32xbf16, #tpu.memory_space<vmem>>, vector<1x64x32xbf16>
    %48 = vector.shape_cast %47 : vector<1x64x32xbf16> to vector<64x32xbf16>
    %c0_52 = arith.constant 0 : index
    %c0_53 = arith.constant 0 : index
    %c0_54 = arith.constant 0 : index
    %49 = vector.load %arg3[%c0_52, %c0_53, %c0_54] : memref<3x64x32xbf16, #tpu.memory_space<vmem>>, vector<1x64x32xbf16>
    %50 = vector.shape_cast %49 : vector<1x64x32xbf16> to vector<64x32xbf16>
    %51 = arith.mulf %48, %50 : vector<64x32xbf16>
    %c2_55 = arith.constant 2 : index
    %c0_56 = arith.constant 0 : index
    %c0_57 = arith.constant 0 : index
    %c0_58 = arith.constant 0 : index
    %52 = vector.load %arg2[%c2_55, %c0_56, %c0_57, %c0_58] : memref<3x3x32x128xbf16, #tpu.memory_space<vmem>>, vector<1x1x32x128xbf16>
    %53 = vector.shape_cast %52 : vector<1x1x32x128xbf16> to vector<32x128xbf16>
    %cst_59 = arith.constant dense<0.000000e+00> : vector<64x128xf32>
    %54 = tpu.matmul %51, %53, %cst_59 {dimension_numbers = #tpu.dot_dimension_numbers<[1], [0], [0], [1], [0, 0, 1, 1], [], []>} : vector<64x32xbf16>, vector<32x128xbf16>, vector<64x128xf32> -> vector<64x128xf32>
    %55 = arith.addf %46, %54 : vector<64x128xf32>
    %c0_60 = arith.constant 0 : index
    %c24 = arith.constant 24 : index
    %c0_61 = arith.constant 0 : index
    %56 = vector.load %arg1[%c0_60, %c24, %c0_61] : memref<1x96x32xbf16, #tpu.memory_space<vmem>>, vector<1x64x32xbf16>
    %57 = vector.shape_cast %56 : vector<1x64x32xbf16> to vector<64x32xbf16>
    %c2_62 = arith.constant 2 : index
    %c1_63 = arith.constant 1 : index
    %c0_64 = arith.constant 0 : index
    %c0_65 = arith.constant 0 : index
    %58 = vector.load %arg2[%c2_62, %c1_63, %c0_64, %c0_65] : memref<3x3x32x128xbf16, #tpu.memory_space<vmem>>, vector<1x1x32x128xbf16>
    %59 = vector.shape_cast %58 : vector<1x1x32x128xbf16> to vector<32x128xbf16>
    %cst_66 = arith.constant dense<0.000000e+00> : vector<64x128xf32>
    %60 = tpu.matmul %57, %59, %cst_66 {dimension_numbers = #tpu.dot_dimension_numbers<[1], [0], [0], [1], [0, 0, 1, 1], [], []>} : vector<64x32xbf16>, vector<32x128xbf16>, vector<64x128xf32> -> vector<64x128xf32>
    %61 = arith.addf %55, %60 : vector<64x128xf32>
    %c0_67 = arith.constant 0 : index
    %c25 = arith.constant 25 : index
    %c0_68 = arith.constant 0 : index
    %62 = vector.load %arg1[%c0_67, %c25, %c0_68] : memref<1x96x32xbf16, #tpu.memory_space<vmem>>, vector<1x64x32xbf16>
    %63 = vector.shape_cast %62 : vector<1x64x32xbf16> to vector<64x32xbf16>
    %c2_69 = arith.constant 2 : index
    %c0_70 = arith.constant 0 : index
    %c0_71 = arith.constant 0 : index
    %64 = vector.load %arg3[%c2_69, %c0_70, %c0_71] : memref<3x64x32xbf16, #tpu.memory_space<vmem>>, vector<1x64x32xbf16>
    %65 = vector.shape_cast %64 : vector<1x64x32xbf16> to vector<64x32xbf16>
    %66 = arith.mulf %63, %65 : vector<64x32xbf16>
    %c2_72 = arith.constant 2 : index
    %c2_73 = arith.constant 2 : index
    %c0_74 = arith.constant 0 : index
    %c0_75 = arith.constant 0 : index
    %67 = vector.load %arg2[%c2_72, %c2_73, %c0_74, %c0_75] : memref<3x3x32x128xbf16, #tpu.memory_space<vmem>>, vector<1x1x32x128xbf16>
    %68 = vector.shape_cast %67 : vector<1x1x32x128xbf16> to vector<32x128xbf16>
    %cst_76 = arith.constant dense<0.000000e+00> : vector<64x128xf32>
    %69 = tpu.matmul %66, %68, %cst_76 {dimension_numbers = #tpu.dot_dimension_numbers<[1], [0], [0], [1], [0, 0, 1, 1], [], []>} : vector<64x32xbf16>, vector<32x128xbf16>, vector<64x128xf32> -> vector<64x128xf32>
    %70 = arith.addf %61, %69 : vector<64x128xf32>
    %71 = arith.truncf %70 : vector<64x128xf32> to vector<64x128xbf16>
    %c0_77 = arith.constant 0 : index
    %c0_78 = arith.constant 0 : index
    %c0_79 = arith.constant 0 : index
    %72 = vector.load %arg4[%c0_77, %c0_78, %c0_79] : memref<1x64x128xbf16, #tpu.memory_space<vmem>>, vector<1x64x128xbf16>
    %73 = vector.shape_cast %72 : vector<1x64x128xbf16> to vector<64x128xbf16>
    %74 = vector.shape_cast %71 : vector<64x128xbf16> to vector<1x64x128xbf16>
    tpu.vector_store %arg4[%c0_77, %c0_78, %c0_79], %74 {strides = array<i32>} : memref<1x64x128xbf16, #tpu.memory_space<vmem>>, vector<1x64x128xbf16>,
    %cst_80 = arith.constant dense<0.000000e+00> : vector<128xf32>
    %75 = vector.multi_reduction <add>, %70, %cst_80 [0] : vector<64x128xf32> to vector<128xf32>
    %76 = vector.shape_cast %75 : vector<128xf32> to vector<1x128xf32>
    %c0_81 = arith.constant 0 : index
    %c0_82 = arith.constant 0 : index
    %c0_83 = arith.constant 0 : index
    %77 = vector.load %arg5[%c0_81, %c0_82, %c0_83] : memref<1x2x128xf32, #tpu.memory_space<vmem>>, vector<1x1x128xf32>
    %78 = vector.shape_cast %77 : vector<1x1x128xf32> to vector<1x128xf32>
    %79 = vector.shape_cast %76 : vector<1x128xf32> to vector<1x1x128xf32>
    tpu.vector_store %arg5[%c0_81, %c0_82, %c0_83], %79 {strides = array<i32>} : memref<1x2x128xf32, #tpu.memory_space<vmem>>, vector<1x1x128xf32>,
    %80 = arith.mulf %70, %70 : vector<64x128xf32>
    %cst_84 = arith.constant dense<0.000000e+00> : vector<128xf32>
    %81 = vector.multi_reduction <add>, %80, %cst_84 [0] : vector<64x128xf32> to vector<128xf32>
    %82 = vector.shape_cast %81 : vector<128xf32> to vector<1x128xf32>
    %c0_85 = arith.constant 0 : index
    %c1_86 = arith.constant 1 : index
    %c0_87 = arith.constant 0 : index
    %83 = vector.load %arg5[%c0_85, %c1_86, %c0_87] : memref<1x2x128xf32, #tpu.memory_space<vmem>>, vector<1x1x128xf32>
    %84 = vector.shape_cast %83 : vector<1x1x128xf32> to vector<1x128xf32>
    %85 = vector.shape_cast %82 : vector<1x128xf32> to vector<1x1x128xf32>
    tpu.vector_store %arg5[%c0_85, %c1_86, %c0_87], %85 {strides = array<i32>} : memref<1x2x128xf32, #tpu.memory_space<vmem>>, vector<1x1x128xf32>,
    return
  }
  func.func @transform_0(%arg0: i32) -> (i32, i32, i32) {
    %c0_i32 = arith.constant 0 : i32
    %c0_i32_0 = arith.constant 0 : i32
    %c0_i32_1 = arith.constant 0 : i32
    return %arg0, %c0_i32, %c0_i32_0 : i32, i32, i32
  }
  func.func @transform_1(%arg0: i32) -> (i32, i32, i32, i32) {
    %c0_i32 = arith.constant 0 : i32
    %c0_i32_0 = arith.constant 0 : i32
    %c0_i32_1 = arith.constant 0 : i32
    %c0_i32_2 = arith.constant 0 : i32
    %c0_i32_3 = arith.constant 0 : i32
    return %c0_i32, %c0_i32_0, %c0_i32_1, %c0_i32_2 : i32, i32, i32, i32
  }
  func.func @transform_2(%arg0: i32) -> (i32, i32, i32) {
    %c0_i32 = arith.constant 0 : i32
    %c0_i32_0 = arith.constant 0 : i32
    %c0_i32_1 = arith.constant 0 : i32
    %c0_i32_2 = arith.constant 0 : i32
    return %c0_i32, %c0_i32_0, %c0_i32_1 : i32, i32, i32
  }
  func.func @transform_3(%arg0: i32) -> (i32, i32, i32) {
    %c0_i32 = arith.constant 0 : i32
    %c0_i32_0 = arith.constant 0 : i32
    %c0_i32_1 = arith.constant 0 : i32
    return %arg0, %c0_i32, %c0_i32_0 : i32, i32, i32
  }
  func.func @transform_4(%arg0: i32) -> (i32, i32, i32) {
    %c0_i32 = arith.constant 0 : i32
    %c0_i32_0 = arith.constant 0 : i32
    %c0_i32_1 = arith.constant 0 : i32
    return %arg0, %c0_i32, %c0_i32_0 : i32, i32, i32
  }
}

</mosaic_0001>

<bundles_post_ra>
// kernel: tpu_custom_call.1
= control target key start
LH: loop header
LB: loop body
LE: loop exit
PB: predicated region body
PF: predicated region fallthrough
CT: control target
= control target key end

     0   :  { %10 = vsyncpa [#allocation3], 0  ;;  %s3348_s0 = inlined_call_operand.vmem [shape: bf16[2,96,32], index: 0, kind: input, shape index: {}]   ;;  %s3349_s1 = inlined_call_operand.vmem [shape: bf16[3,3,32,128], index: 1, kind: input, shape index: {}]   ;;  %s3350_s2 = inlined_call_operand.vmem [shape: bf16[3,64,32], index: 2, kind: input, shape index: {}]   ;;  %s3351_s3 = inlined_call_operand.hbm [shape: bf16[2,64,128], index: 3, kind: output, shape index: {0}]   ;;  %s3352_s4 = inlined_call_operand.hbm [shape: f32[2,2,128], index: 4, kind: output, shape index: {1}]  }
   0x1   :  { %12 = vsyncpa [#allocation3 + $0x1], 0 }
   0x2   :  { %13 = vsyncpa [#allocation5], 0 }
   0x3   :  { %15 = vsyncpa [#allocation5 + $0x1], 0  ;;  %s2659_s15 = smov 0   ;;  %s2661_s16 = smov 0  }
   0x4   :  { %s2663_s17 = smov 0   ;;  %s2665_s18 = smov 0  }
   0x5 LB: > { %s2680_s19 = sadd.s32 4294967295, %s2628_s18   ;;  %s2037_s20 = sadd.s32 4294967294, %s2628_s18   ;;  %s2628_s18 = sphi %s2665_s18, %s3368_s18   ;;  %s2624_s17 = sphi %s2663_s17, %s3367_s17   ;;  %s2620_s16 = sphi %s2661_s16, %s3366_s16   ;;  %s2616_s15 = sphi %s2659_s15, %s3365_s15  }
   0x6   : > { %s2684_s21 = sadd.s32 1, %s2628_s18   ;;  %s96_s22 = sadd.s32 1, %s2624_s17 }
   0x7   : > { %s93_s23 = ssub.s32 %s2628_s18, %s2684_s21  ;;  %p106_p0 = scmp.ne.s32.totalorder %s2624_s17, %s2620_s16 }
   0x8   : > { %p94_p1 = scmp.eq.s32.totalorder %s93_s23, 0  ;;  %p107_p2 = scmp.eq.s32.totalorder %s2680_s19, 1 }
   0x9   : > { %p112_p3 = scmp.ne.s32.totalorder %s2620_s16, %s2616_s15  ;;  %p113_p4 = scmp.eq.s32.totalorder %s2037_s20, 1 }
   0xa   : > { %s2695_s24 = scalar_select %p94_p1, %s2624_s17, %s96_s22  }
   0xb   : > { %p2697_p5 = por %p107_p2, %p106_p0  ;;  %p2701_p6 = por %p113_p4, %p112_p3 }
   0xc   : > { %p2040_p7 = scmp.ge.s32.totalorder %s2628_s18, 1  ;;  %p171_p8 = scmp.lt.s32.totalorder %s2628_s18, 3 }
   0xe   : > { %p172_p9 = pnand %p2040_p7, %p171_p8 }
   0xf   : > { %v2504_v0 = vld [vmem:[%s3349_s1 + $0x10] sm:$0xff] (!%p172_p9)   ;;  %p202_p10 = scmp.lt.s32.totalorder (!%p172_p9), %s2680_s19, 1  ;;  %v2714_v1 = vld [vmem:[%s3349_s1 + $0x40] sm:$0xff] (!%p172_p9)   ;;  %v2506_v2 = vld [vmem:[%s3349_s1 + $0x18] sm:$0xff] (!%p172_p9)   ;;  %vm366_vm0 = vcmask (!%p172_p9), 261120   ;;  %s2203_s12 = sshll.u32 (!%p172_p9), %s2680_s19, 9 }
  0x10   : > { %175 = sbr.rel (%p172_p9) target bundleno = 392 (0x188), region = 32  ;;  %2281 = vmatprep.subr.bf16.mxu1 (!%p172_p9), %v2504_v0  ;;  %2329 = vmatprep.subr.bf16.mxu0 (!%p172_p9), %v2714_v1  ;;  %v2724_v3 = vld [vmem:[%s3349_s1 + $0x48] sm:$0xff] (!%p172_p9)   ;;  %v217_v4 = vld [vmem:[%s3350_s2] sm:$0xf] (!%p172_p9)  ;;  %v218_v5 = vld [vmem:[%s3350_s2 + $0x4] sm:$0xf] (!%p172_p9)  ;;  %s3270_s20 = scalar_lea.hbm (!%p172_p9), %s3351_s3, %s2203_s12 }
  0x11   : > { %2282 = vmatpush3.bf16.msra.mxu1 (!%p172_p9), %v2504_v0  ;;  %2330 = vmatpush3.bf16.msra.mxu0 (!%p172_p9), %v2714_v1  ;;  %v2736_v6 = vld [vmem:[%s3349_s1] sm:$0xff] (!%p172_p9)   ;;  %v219_v7 = vld [vmem:[%s3350_s2 + $0x8] sm:$0xf] (!%p172_p9)  ;;  %v220_v8 = vld [vmem:[%s3350_s2 + $0xc] sm:$0xf] (!%p172_p9)  ;;  %v229_v9 = vshll.u32 (!%p172_p9), %v217_v4, 16 }
  0x12   : > { %2283 = vmatprep.subr.bf16.mxu1 (!%p172_p9), %v2506_v2  ;;  %2331 = vmatprep.subr.bf16.mxu0 (!%p172_p9), %v2724_v3  ;;  %vm225_vm1 = vsmask.f32 (!%p172_p9), 3328  ;;  %v232_v10 = vshrl.u32 (!%p172_p9), %v217_v4, 16  ;;  %v238_v11 = vshll.u32 (!%p172_p9), %v218_v5, 16  ;;  %v2753_v12 = vld [vmem:[%s3349_s1 + $0x50] sm:$0xff] (!%p172_p9)   ;;  %v242_v18 = vshrl.u32 (!%p172_p9), %v218_v5, 16 }
  0x13   : > { %vm226_vm2 = vsmask.f32 (!%p172_p9), 7440  ;;  %v2758_v15 = vrot.slane (!%p172_p9), %v229_v9, 5  ;;  %v248_v19 = vshll.u32 (!%p172_p9), %v219_v7, 16  ;;  %v252_v20 = vshrl.u32 (!%p172_p9), %v219_v7, 16  ;;  %s2630_s27 = smov (!%p172_p9), [#allocation2]  }
  0x14   : > { %v234_v16 = vrot.slane (!%p172_p9), %v232_v10, 4  ;;  %v240_v17 = vrot.slane (!%p172_p9), %v238_v11, 5  ;;  %v258_v21 = vshll.u32 (!%p172_p9), %v220_v8, 16  ;;  %v262_v22 = vshrl.u32 (!%p172_p9), %v220_v8, 16  ;;  %vm2766_vm3 = vmor (!%p172_p9), %vm225_vm1, %vm226_vm2  ;;  %v2069_v39 = vld [vmem:[%s3350_s2 + $0x40] sm:$0xf] (!%p172_p9) }
  0x15   : > { %2284 = vmatpush3.bf16.msra.mxu1 (!%p172_p9), %v2506_v2  ;;  %2332 = vmatpush3.bf16.msra.mxu0 (!%p172_p9), %v2724_v3  ;;  %v244_v25 = vrot.slane (!%p172_p9), %v242_v18, 4  ;;  %v250_v28 = vrot.slane (!%p172_p9), %v248_v19, 5  ;;  %v254_v29 = vrot.slane (!%p172_p9), %v252_v20, 4  ;;  %v623_v42 = vshrl.u32 (!%p172_p9), %v2069_v39, 16  ;;  %v2070_v51 = vld [vmem:[%s3350_s2 + $0x44] sm:$0xf] (!%p172_p9) }
  0x16   : > { %2293 = vmatprep.subr.bf16.mxu1 (!%p172_p9), %v2736_v6  ;;  %2341 = vmatprep.subr.bf16.mxu0 (!%p172_p9), %v2753_v12  ;;  %v235_v24 = vor.u32 (!%p172_p9), %v234_v16, %v2758_v15  ;;  %v2770_v32 = vrot.slane (!%p172_p9), %v258_v21, 5  ;;  %v2772_v33 = vrot.slane (!%p172_p9), %v262_v22, 4  ;;  %v2071_v55 = vld [vmem:[%s3350_s2 + $0x48] sm:$0xf] (!%p172_p9)  ;;  %v626_v57 = vshll.u32 (!%p172_p9), %v2069_v39, 16  ;;  %s2538_s28 = sshll.u32 (!%p172_p9), %s2630_s27, 4  ;;  %s2539_s28 = int_to_ptr.vmem [resolvable:$false] %s2538_s28 }
  0x17   : > { %s203_s7 = scalar_select %p202_p10, %s2680_s19, 1  ;;  %v245_v31 = vor.u32 %v244_v25, %v240_v17  ;;  %v255_v35 = vor.u32 %v254_v29, %v250_v28  ;;  %v625_v56 = vrot.slane %v623_v42, 7  ;;  %v2072_v62 = vld [vmem:[%s3350_s2 + $0x4c] sm:$0xf]  ;;  %vm619_vm4 = vsmask.f32 256 }
  0x18   : > { %v236_v30 = vrot.slane %v235_v24, 4  ;;  %v265_v58 = vor.u32 %v2772_v33, %v2770_v32  ;;  %vm620_vm5 = vsmask.f32 4368  ;;  %v631_v2 = vshrl.u32 %v2070_v51, 16  ;;  %s2540_s29 = scalar_lea.vmem %s2539_s28, 1024 }
  0x19   : > { %s2457_s10 = smul.u32 48, %s203_s7  ;;  %v246_v41 = vrot.slane %v245_v31, 4  ;;  %v256_v44 = vrot.slane %v255_v35, 4  ;;  %v634_v7 = vshll.u32 %v2070_v51, 16  ;;  %v640_v8 = vshrl.u32 %v2071_v55, 16  ;;  %vm2834_vm6 = vmor %vm619_vm4, %vm620_vm5 }
  0x1a   : > { %v2788_v40 = vsel %vm2766_vm3, %v236_v30, %v240_v17  ;;  %v2831_v10 = vor.u32 %v626_v57, %v625_v56  ;;  %v629_v11 = vrot.slane %v625_v56, 4  ;;  %v649_v20 = vshrl.u32 %v2072_v62, 16 }
  0x1b   : > { %s2748_s6 = scalar_lea.vmem %s3348_s0, %s2457_s10  ;;  %v251_v48 = vsel %vm2766_vm3, %v246_v41, %v250_v28  ;;  %v261_v52 = vsel %vm2766_vm3, %v256_v44, %v2770_v32  ;;  %v642_v19 = vrot.slane %v640_v8, 7  ;;  %v652_v25 = vshll.u32 %v2072_v62, 16  ;;  %v2073_v62 = vld [vmem:[%s3350_s2 + $0x50] sm:$0xf] }
  0x1c   : > { %v209_v13 = vld [vmem:[%s2748_s6 + $0x4] sm:$0xf]  ;;  %v210_v14 = vld [vmem:[%s2748_s6 + $0x8] sm:$0xf]  ;;  %v208_v23 = vld [vmem:[%s2748_s6] sm:$0x8] }
  0x1d   : > { %v2048_v26 = vcombine.low %v209_v13, %v210_v14  ;;  %v2776_v34 = vld [vmem:[%s2748_s6 + $0x8] sm:$0xf]  ;;  %v316_v36 = vmul.bf16 %v2758_v15, %v208_v23  ;;  %v2781_v38 = vld [vmem:[%s2748_s6 + $0xc] sm:$0xf]  ;;  %v317_v45 = vmul.bf16 %v2788_v40, %v209_v13  ;;  %v318_v53 = vmul.bf16 %v251_v48, %v210_v14  ;;  %v2812_v54 = vld [vmem:[%s2748_s6 + $0x10] sm:$0xf] }
  0x1e   : > { %v1354_v37 = vld [vmem:[%s2748_s6 + $0x8] sm:$0x8]  ;;  %v2111_v43 = vcombine.low %v2776_v34, %v2781_v38  ;;  %v2794_v46 = vld [vmem:[%s2748_s6 + $0xc] sm:$0xf]  ;;  %v2821_v61 = vld [vmem:[%s2748_s6 + $0x14] sm:$0xf]  ;;  %v1358_v63 = vmul.bf16 %v2812_v54, %v251_v48  ;;  %v876_v39 = vmul.bf16 %v2776_v34, %v2788_v40 }
  0x1f   : > { %2285 = vmatprep.mubr.msk.bf16.mxu1 %vm366_vm0, %v2048_v26  ;;  %v2797_v47 = vld [vmem:[%s2748_s6 + $0xc] sm:$0xf]  ;;  %v1356_v49 = vmul.bf16 %v1354_v37, %v2758_v15  ;;  %v1357_v50 = vmul.bf16 %v2794_v46, %v2788_v40  ;;  %v2058_v60 = vcombine.low %v316_v36, %v317_v45  ;;  %v1359_v0 = vmul.bf16 %v2821_v61, %v261_v52  ;;  %v601_v9 = vld [vmem:[%s2748_s6 + $0x4] sm:$0xf]  ;;  %v2840_v28 = vld [vmem:[%s2748_s6 + $0x10] sm:$0xf] }
  0x20   : > { %2333 = vmatprep.mubr.msk.bf16.mxu0 %vm366_vm0, %v2111_v43  ;;  %v319_v59 = vmul.bf16 %v261_v52, %v2797_v47  ;;  %v633_v13 = vrot.slane %v631_v2, 7  ;;  %v643_v14 = vshll.u32 %v2071_v55, 16  ;;  %v873_v21 = vld [vmem:[%s2748_s6 + $0x4] sm:$0x8]  ;;  %v647_v30 = vrot.slane %v642_v19, 4 }
  0x21   : > { %v2828_v5 = vcombine.low %v1356_v49, %v1357_v50  ;;  %v469_v16 = vshrl.u32 %v2058_v60, 16  ;;  %v472_v17 = vshll.u32 %v2058_v60, 16  ;;  %v702_v31 = vmul.bf16 %v2831_v10, %v601_v9  ;;  %v2892_v60 = vld [vmem:[%s2748_s6 + $0x14] sm:$0xf] }
  0x22   : > { %v2059_v4 = vcombine.low %v318_v53, %v319_v59  ;;  %v636_v23 = vor.u32 %v634_v7, %v633_v13  ;;  %v638_v24 = vrot.slane %v633_v13, 4  ;;  %v645_v29 = vor.u32 %v643_v14, %v642_v19  ;;  %v2876_v53 = vld [vmem:[%s2748_s6 + $0x10] sm:$0xf]  ;;  %v222_v7 = vld [vmem:[%s3350_s2 + $0x14] sm:$0xf] }
  0x23   : > { %v2847_v36 = vrot.slane %v649_v20, 7  ;;  %v875_v37 = vmul.bf16 %v873_v21, %v2758_v15  ;;  %v2852_v41 = vcombine.low %v1358_v63, %v1359_v0  ;;  %v877_v43 = vmul.bf16 %v2781_v38, %v251_v48  ;;  %v223_v14 = vld [vmem:[%s3350_s2 + $0x18] sm:$0xf] }
  0x24   : > { %v477_v22 = vshrl.u32 %v2059_v4, 16  ;;  %v480_v26 = vshll.u32 %v2059_v4, 16  ;;  %v2845_v35 = vsel %vm2834_vm6, %v629_v11, %v636_v23  ;;  %v878_v44 = vmul.bf16 %v2840_v28, %v261_v52  ;;  %v221_v52 = vld [vmem:[%s3350_s2 + $0x10] sm:$0xf] }
  0x25   : > { %v703_v42 = vmul.bf16 %v2845_v35, %v2776_v34  ;;  %v2858_v45 = vrot.slane %v469_v16, 3  ;;  %v2862_v49 = vsel %vm2834_vm6, %v638_v24, %v645_v29  ;;  %v654_v15 = vor.u32 %v652_v25, %v2847_v36  ;;  %v2517_v16 = vld [vmem:[%s3349_s1 + $0x8] sm:$0xff]  }
  0x26   : > { %v2865_v50 = vcombine.low %v875_v37, %v876_v39  ;;  %v2867_v40 = vrot.slane %v472_v17, 4  ;;  %v2869_v51 = vrot.slane %v477_v22, 3  ;;  %v2873_v48 = vcombine.low %v877_v43, %v878_v44  ;;  %v2514_v22 = vld [vmem:[%s3349_s1 + $0x58] sm:$0xff]   ;;  %v1175_v43 = vld [vmem:[%s2748_s6 + $0x8] sm:$0xf] }
  0x27   : > { %v2871_v34 = vcombine.low %v702_v31, %v703_v42  ;;  %v2881_v55 = vrot.slane %v480_v26, 4  ;;  %v2885_v56 = vsel %vm2834_vm6, %v647_v30, %v654_v15  ;;  %v704_v57 = vmul.bf16 %v2862_v49, %v2781_v38  ;;  %v2074_v38 = vld [vmem:[%s3350_s2 + $0x54] sm:$0xf]  ;;  %v2935_v30 = vld [vmem:[%s2748_s6 + $0x18] sm:$0xf] }
  0x28   : > { %v1185_v59 = vmul.bf16 %v2794_v46, %v2845_v35  ;;  %v705_v63 = vmul.bf16 %v2885_v56, %v2840_v28  ;;  %v1186_v4 = vmul.bf16 %v2812_v54, %v2862_v49  ;;  %v266_v8 = vrot.slane %v265_v58, 4  ;;  %v2942_v37 = vld [vmem:[%s2748_s6 + $0x18] sm:$0xf] }
  0x29   : > { %v268_v9 = vshll.u32 %v221_v52, 16  ;;  %v272_v11 = vshrl.u32 %v221_v52, 16  ;;  %v2049_v13 = vcombine.low %v2797_v47, %v2876_v53  ;;  %v743_v17 = vshll.u32 %v2871_v34, 16 }
  0x2a   : > { %v658_v32 = vshrl.u32 %v2073_v62, 16  ;;  %v661_v33 = vshll.u32 %v2073_v62, 16  ;;  %v667_v47 = vshrl.u32 %v2074_v38, 16  ;;  %v670_v20 = vshll.u32 %v2074_v38, 16 }
  0x2b   : > { %v270_v58 = vrot.slane %v268_v9, 5  ;;  %2286 = vmatmul.mubr.msk.bf16.vlgmr.msra.gmra.mrb[0].mxu1 %vm366_vm0, %v2049_v13  ;;  %v2112_v21 = vcombine.low %v2840_v28, %v2892_v60  ;;  %v656_v23 = vrot.slane %v2847_v36, 4  ;;  %v274_v25 = vrot.slane %v272_v11, 4  ;;  %v213_v28 = vld [vmem:[%s2748_s6 + $0x14] sm:$0xf] }
  0x2c   : > { %v660_v24 = vrot.slane %v658_v32, 7  ;;  %2294 = vmatpush3.bf16.msra.mxu1 %v2736_v6  ;;  %v278_v26 = vshll.u32 %v222_v7, 16  ;;  %v2937_v31 = vrot.slane %v667_v47, 7  ;;  %v282_v36 = vshrl.u32 %v222_v7, 16  ;;  %v2947_v6 = vld [vmem:[%s3349_s1 + $0x20] sm:$0xff]  }
  0x2d   : > { %v2932_v29 = vsel %vm2766_vm3, %v266_v8, %v270_v58  ;;  %2334 = vmatmul.mubr.msk.bf16.vlgmr.msra.gmra.mrb[0].mxu0 %vm366_vm0, %v2112_v21  ;;  %v288_v39 = vshll.u32 %v223_v14, 16  ;;  %2295 = vmatprep.subr.bf16.mxu1 %v2517_v16  ;;  %v2949_v42 = vcombine.low %v704_v57, %v705_v63  ;;  %v275_v38 = vor.u32 %v274_v25, %v270_v58  ;;  %v2957_v8 = vld [vmem:[%s2748_s6 + $0x1c] sm:$0xf]  ;;  %v2962_v57 = vld [vmem:[%s3349_s1 + $0x60] sm:$0xff]  }
  0x2e   : > { %v663_v44 = vor.u32 %v661_v33, %v660_v24  ;;  %v665_v15 = vrot.slane %v660_v24, 4  ;;  %2342 = vmatpush3.bf16.msra.mxu0 %v2753_v12  ;;  %v320_v52 = vmul.bf16 %v2932_v29, %v2876_v53  ;;  %v672_v62 = vor.u32 %v670_v20, %v2937_v31  ;;  %v216_v11 = vld [vmem:[%s2748_s6 + $0x20] sm:$0xf]  ;;  %v224_v13 = vld [vmem:[%s3350_s2 + $0x1c] sm:$0xf] }
  0x2f   : > { %2343 = vmatprep.subr.bf16.mxu0 %v2514_v22  ;;  %v280_v7 = vrot.slane %v278_v26, 5  ;;  %v879_v12 = vmul.bf16 %v2892_v60, %v2932_v29  ;;  %v284_v53 = vrot.slane %v282_v36, 4  ;;  %v292_v9 = vshrl.u32 %v223_v14, 16  ;;  %v2982_v20 = vld [vmem:[%s2748_s6 + $0x18] sm:$0xf] }
  0x30   : > { %v2966_v63 = vsel %vm2834_vm6, %v656_v23, %v663_v44  ;;  %2296 = vmatpush3.bf16.msra.mxu1 %v2517_v16  ;;  %v2976_v32 = vsel %vm2834_vm6, %v665_v15, %v672_v62  ;;  %v276_v58 = vrot.slane %v275_v38, 4  ;;  %v290_v47 = vrot.slane %v288_v39, 5 }
  0x31   : > { %v706_v33 = vmul.bf16 %v2966_v63, %v2892_v60  ;;  %2305 = vmatprep.subr.bf16.mxu1 %v2947_v6  ;;  %v707_v14 = vmul.bf16 %v2976_v32, %v2935_v30  ;;  %v285_v21 = vor.u32 %v284_v53, %v280_v7  ;;  %v2050_v16 = vcombine.low %v213_v28, %v2942_v37  ;;  %v2990_v60 = vld [vmem:[%s2748_s6 + $0x1c] sm:$0xf] }
  0x32   : > { %2344 = vmatpush3.bf16.msra.mxu0 %v2514_v22  ;;  %v294_v23 = vrot.slane %v292_v9, 4  ;;  %v281_v24 = vsel %vm2766_vm3, %v276_v58, %v280_v7  ;;  %v298_v25 = vshll.u32 %v224_v13, 16  ;;  %v302_v26 = vshrl.u32 %v224_v13, 16  ;;  %v2997_v22 = vld [vmem:[%s2748_s6 + $0x1c] sm:$0xf] }
  0x33   : > { %v2051_v36 = vcombine.low %v2957_v8, %v216_v11  ;;  %2353 = vmatprep.subr.bf16.mxu0 %v2962_v57  ;;  %v286_v44 = vrot.slane %v285_v21, 4  ;;  %v321_v15 = vmul.bf16 %v281_v24, %v213_v28  ;;  %2289 = vmatprep.mubr.msk.bf16.mxu1 %vm366_vm0, %v2050_v16  ;;  %v880_v62 = vmul.bf16 %v2935_v30, %v281_v24  ;;  %v3003_v7 = vld [vmem:[%s2748_s6 + $0x20] sm:$0xf] }
  0x34   : > { %v1360_v38 = vmul.bf16 %v2982_v20, %v2932_v29  ;;  %v295_v53 = vor.u32 %v294_v23, %v290_v47  ;;  %v300_v9 = vrot.slane %v298_v25, 5  ;;  %v304_v13 = vrot.slane %v302_v26, 4 }
  0x35   : > { %2290 = vmatmul.mubr.msk.bf16.gmra.mrb[4].mxu1 %vm366_vm0, %v2051_v36  ;;  %v3006_v58 = vcombine.low %v706_v33, %v707_v14  ;;  %v3010_v28 = vsel %vm2766_vm3, %v286_v44, %v290_v47  ;;  %v2060_v21 = vcombine.low %v320_v52, %v321_v15  ;;  %v1361_v16 = vmul.bf16 %v2990_v60, %v281_v24 }
  0x36   : > { %v322_v29 = vmul.bf16 %v3010_v28, %v2942_v37  ;;  %v3018_v25 = vcombine.low %v879_v12, %v880_v62  ;;  %v1362_v33 = vmul.bf16 %v3003_v7, %v3010_v28  ;;  %v296_v47 = vrot.slane %v295_v53, 4 }
  0x37   : > { %v486_v14 = vshrl.u32 %v2060_v21, 16  ;;  %v489_v26 = vshll.u32 %v2060_v21, 16  ;;  %v305_v36 = vor.u32 %v304_v13, %v300_v9  ;;  %vm739_vm7 = vsmask.f32 7424  ;;  %v3038_v13 = vld [vmem:[%s2748_s6 + $0x24] sm:$0xf] }
  0x38   : > { %v1184_v52 = vmul.bf16 %v1175_v43, %v2831_v10  ;;  %v1187_v24 = vmul.bf16 %v2821_v61, %v2885_v56  ;;  %v1188_v37 = vmul.bf16 %v2982_v20, %v2966_v63  ;;  %v1189_v12 = vmul.bf16 %v2990_v60, %v2976_v32 }
  0x39   : > { %v488_v44 = vrot.slane %v486_v14, 3  ;;  %v3029_v15 = vcombine.low %v1360_v38, %v1361_v16  ;;  %v3033_v62 = vsel %vm2766_vm3, %v296_v47, %v300_v9  ;;  %v3035_v53 = vrot.slane %v305_v36, 4  ;;  %v2075_v36 = vld [vmem:[%s3350_s2 + $0x58] sm:$0xf] }
  0x3a   : > { %v491_v43 = vrot.slane %v489_v26, 4  ;;  %v323_v21 = vmul.bf16 %v3033_v62, %v2957_v8  ;;  %v1363_v23 = vmul.bf16 %v3038_v13, %v3033_v62  ;;  %v2125_v38 = vcombine.low %v1184_v52, %v1185_v59 }
  0x3b   : > { %v324_v16 = vmul.bf16 %v3035_v53, %v216_v11  ;;  %v2126_v27 = vcombine.low %v1186_v4, %v1187_v24  ;;  %v2127_v9 = vcombine.low %v1188_v37, %v1189_v12  ;;  %vm467_vm8 = vsmask.f32 4352  ;;  %v2076_v4 = vld [vmem:[%s3350_s2 + $0x5c] sm:$0xf] }
  0x3c   : > { %v2061_v14 = vcombine.low %v322_v29, %v323_v21  ;;  %v1222_v26 = vshrl.u32 %v2125_v38, 16  ;;  %v1224_v47 = vshll.u32 %v2125_v38, 16  ;;  %v475_v8 = vor.u32 %v2867_v40, %v2858_v45 }
  0x3d   : > { %v2062_v19 = vcombine.low %v324_v16, %v324_v16  ;;  %v1229_v59 = vshll.u32 %v2126_v27, 16  ;;  %v1233_v52 = vshrl.u32 %v2126_v27, 16  ;;  %v1237_v11 = vshll.u32 %v2127_v9, 16 }
  0x3e   : > { %v1226_v24 = vrot.slane %v1224_v47, 1  ;;  %v483_v29 = vor.u32 %v2881_v55, %v2869_v51  ;;  %v492_v37 = vor.u32 %v491_v43, %v488_v44  ;;  %v674_v12 = vrot.slane %v2937_v31, 4  ;;  %v2521_v47 = vld [vmem:[%s3349_s1 + $0x28] sm:$0xff]  }
  0x3f   : > { %v1231_v45 = vrot.slane %v1229_v59, 1  ;;  %v1239_v40 = vrot.slane %v1237_v11, 1  ;;  %v676_v21 = vshrl.u32 %v2075_v36, 16  ;;  %v679_v38 = vshll.u32 %v2075_v36, 16 }
  0x40   : > { %v1227_v2 = vor.u32 %v1226_v24, %v1222_v26  ;;  %v484_v16 = vsel %vm467_vm8, %v475_v8, %v483_v29  ;;  %v493_v27 = vsel %vm467_vm8, %v483_v29, %v492_v37  ;;  %v685_v0 = vshrl.u32 %v2076_v4, 16  ;;  %v2520_v26 = vld [vmem:[%s3349_s1 + $0x68] sm:$0xff]  }
  0x41   : > { %v1235_v39 = vor.u32 %v1233_v52, %v1231_v45  ;;  %2297 = vmatprep.mubr.msk.bf16.mxu1 %vm366_vm0, %v484_v16  ;;  %v678_v51 = vrot.slane %v676_v21, 7  ;;  %v688_v55 = vshll.u32 %v2076_v4, 16  ;;  %v1241_v31 = vshrl.u32 %v2127_v9, 16  ;;  %v1183_v4 = vld [vmem:[%s2748_s6 + $0x28] sm:$0x1] }
  0x42   : > { %v1232_v44 = vsel %vm739_vm7, %v1227_v2, %v1231_v45  ;;  %2298 = vmatmul.mubr.msk.bf16.vlgmr.msra.gmra.mrb[0].mxu1 %vm366_vm0, %v493_v27  ;;  %v687_v43 = vrot.slane %v685_v0, 7  ;;  %v495_v8 = vshrl.u32 %v2061_v14, 16  ;;  %v498_v36 = vshll.u32 %v2061_v14, 16  ;;  %v3083_v14 = vld [vmem:[%s3349_s1 + $0x30] sm:$0xff]  }
  0x43   : > { %2345 = vmatprep.mubr.msk.bf16.mxu0 %vm366_vm0, %v1232_v44  ;;  %v1240_v59 = vsel %vm739_vm7, %v1235_v39, %v1239_v40  ;;  %2306 = vmatpush3.bf16.msra.mxu1 %v2947_v6  ;;  %v681_v52 = vor.u32 %v679_v38, %v678_v51  ;;  %v683_v11 = vrot.slane %v678_v51, 4  ;;  %v1243_v9 = vor.u32 %v1241_v31, %v1239_v40 }
  0x44   : > { %2346 = vmatmul.mubr.msk.bf16.vlgmr.msra.gmra.mrb[0].mxu0 %vm366_vm0, %v1240_v59  ;;  %v690_v2 = vor.u32 %v688_v55, %v687_v43  ;;  %v3078_v0 = vrot.slane %v687_v43, 4  ;;  %v497_v24 = vrot.slane %v495_v8, 3  ;;  %v500_v29 = vrot.slane %v498_v36, 4  ;;  %2307 = vmatprep.subr.bf16.mxu1 %v2521_v47 }
  0x45   : > { %2354 = vmatpush3.bf16.msra.mxu0 %v2962_v57  ;;  %v3088_v6 = vsel %vm2834_vm6, %v674_v12, %v681_v52  ;;  %v504_v39 = vshrl.u32 %v2062_v19, 16  ;;  %v507_v45 = vshll.u32 %v2062_v19, 16  ;;  %v1394_v40 = vshrl.u32 %v2828_v5, 16  ;;  %v3101_v57 = vld [vmem:[%s3349_s1 + $0x70] sm:$0xff]  }
  0x46   : > { %v3093_v21 = vsel %vm2834_vm6, %v683_v11, %v690_v2  ;;  %v1190_v38 = vmul.bf16 %v3003_v7, %v3088_v6  ;;  %v1192_v16 = vmul.bf16 %v1183_v4, %v3078_v0  ;;  %2355 = vmatprep.subr.bf16.mxu0 %v2520_v26  ;;  %v501_v27 = vor.u32 %v500_v29, %v497_v24 }
  0x47   : > { %v1191_v19 = vmul.bf16 %v3038_v13, %v3093_v21  ;;  %v506_v12 = vrot.slane %v504_v39, 3  ;;  %v509_v51 = vrot.slane %v507_v45, 4  ;;  %2308 = vmatpush3.bf16.msra.mxu1 %v2521_v47  ;;  %v1396_v18 = vrot.slane %v1394_v40, 3  ;;  %v3117_v40 = vld [vmem:[%s2748_s6 + $0x20] sm:$0xf] }
  0x48   : > { %v2129_v55 = vcombine.low %v1192_v16, %v1192_v16  ;;  %v502_v31 = vsel %vm467_vm8, %v492_v37, %v501_v27  ;;  %v1397_v44 = vshll.u32 %v2828_v5, 16  ;;  %v1402_v43 = vshrl.u32 %v2852_v41, 16  ;;  %2317 = vmatprep.subr.bf16.mxu1 %v3083_v14 }
  0x49   : > { %v2128_v8 = vcombine.low %v1190_v38, %v1191_v19  ;;  %2356 = vmatpush3.bf16.msra.mxu0 %v2520_v26  ;;  %2301 = vmatprep.mubr.msk.bf16.mxu1 %vm366_vm0, %v502_v31  ;;  %v510_v36 = vor.u32 %v509_v51, %v506_v12  ;;  %v1405_v59 = vshll.u32 %v2852_v41, 16  ;;  %v1411_v47 = vshrl.u32 %v3029_v15, 16 }
  0x4a   : > { %v1253_v52 = vshll.u32 %v2129_v55, 16  ;;  %v1399_v11 = vrot.slane %v1397_v44, 4  ;;  %v1404_v4 = vrot.slane %v1402_v43, 3  ;;  %v1414_v37 = vshll.u32 %v3029_v15, 16  ;;  %2365 = vmatprep.subr.bf16.mxu0 %v3101_v57  ;;  %v3133_v55 = vld [vmem:[%s2748_s6 + $0x28] sm:$0xf] }
  0x4b   : > { %v1245_v5 = vshll.u32 %v2128_v8, 16  ;;  %v1249_v2 = vshrl.u32 %v2128_v8, 16  ;;  %v511_v24 = vsel %vm467_vm8, %v501_v27, %v510_v36  ;;  %v1407_v26 = vrot.slane %v1405_v59, 4 }
  0x4c   : > { %v1255_v29 = vrot.slane %v1253_v52, 1  ;;  %2302 = vmatmul.mubr.msk.bf16.gmra.mrb[4].mxu1 %vm366_vm0, %v511_v24  ;;  %v1400_v41 = vor.u32 %v1399_v11, %v1396_v18  ;;  %v1413_v39 = vrot.slane %v1411_v47, 3  ;;  %v1416_v45 = vrot.slane %v1414_v37, 4  ;;  %v609_v47 = vld [vmem:[%s2748_s6 + $0x24] sm:$0x1] }
  0x4d   : > { %v1247_v38 = vrot.slane %v1245_v5, 1  ;;  %v1408_v16 = vor.u32 %v1407_v26, %v1404_v4  ;;  %v741_v15 = vshrl.u32 %v2871_v34, 16  ;;  %v745_v19 = vrot.slane %v743_v17, 1 }
  0x4e   : > { %v882_v27 = vmul.bf16 %v3117_v40, %v3033_v62  ;;  %v748_v12 = vshll.u32 %v2949_v42, 16  ;;  %v756_v51 = vshll.u32 %v3006_v58, 16  ;;  %v2143_v18 = vcombine.low %v1362_v33, %v1363_v23 }
  0x4f   : > { %v1248_v34 = vsel %vm739_vm7, %v1243_v9, %v1247_v38  ;;  %v1251_v31 = vor.u32 %v1249_v2, %v1247_v38  ;;  %v1417_v17 = vor.u32 %v1416_v45, %v1413_v39  ;;  %v746_v44 = vor.u32 %v745_v19, %v741_v15  ;;  %v2525_v39 = vld [vmem:[%s3349_s1 + $0x38] sm:$0xff]  }
  0x50   : > { %2349 = vmatprep.mubr.msk.bf16.mxu0 %vm366_vm0, %v1248_v34  ;;  %v1409_v43 = vsel %vm467_vm8, %v1400_v41, %v1408_v16  ;;  %v750_v8 = vrot.slane %v748_v12, 1  ;;  %v758_v36 = vrot.slane %v756_v51, 1  ;;  %v1420_v59 = vshrl.u32 %v2143_v18, 16 }
  0x51   : > { %v1256_v52 = vsel %vm739_vm7, %v1251_v31, %v1255_v29  ;;  %v1423_v11 = vshll.u32 %v2143_v18, 16  ;;  %v1364_v23 = vmul.bf16 %v3133_v55, %v3035_v53  ;;  %v708_v33 = vmul.bf16 %v3088_v6, %v2997_v22 }
  0x52   : > { %2350 = vmatmul.mubr.msk.bf16.gmra.mrb[4].mxu0 %vm366_vm0, %v1256_v52  ;;  %v751_v9 = vsel %vm739_vm7, %v746_v44, %v750_v8  ;;  %v3359_v4 = vshrl.u32 %v2949_v42, 16  ;;  %v1422_v5 = vrot.slane %v1420_v59, 3  ;;  %v709_v2 = vmul.bf16 %v3093_v21, %v3117_v40 }
  0x53   : > { %2357 = vmatprep.mubr.msk.bf16.mxu0 %vm366_vm0, %v1409_v43  ;;  %2309 = vmatprep.mubr.msk.bf16.mxu1 %vm366_vm0, %v751_v9  ;;  %v1425_v24 = vrot.slane %v1423_v11, 4  ;;  %v2144_v26 = vcombine.low %v1364_v23, %v1364_v23  ;;  %v760_v29 = vshrl.u32 %v3006_v58, 16  ;;  %v710_v41 = vmul.bf16 %v3078_v0, %v609_v47  ;;  %v1657_v23 = vld [vmem:[%s2748_s6 + $0x10] sm:$0xf] }
  0x54   : > { %v754_v37 = vor.u32 %v3359_v4, %v750_v8  ;;  %v1418_v42 = vsel %vm467_vm8, %v1408_v16, %v1417_v17  ;;  %v2084_v38 = vcombine.low %v708_v33, %v709_v2  ;;  %v3360_v15 = vshrl.u32 %v2865_v50, 16 }
  0x55   : > { %v1426_v12 = vor.u32 %v1425_v24, %v1422_v5  ;;  %v1429_v51 = vshrl.u32 %v2144_v26, 16  ;;  %v1432_v58 = vshll.u32 %v2144_v26, 16  ;;  %v762_v18 = vor.u32 %v760_v29, %v758_v36  ;;  %v3179_v29 = vld [vmem:[%s2748_s6 + $0x24] sm:$0xf] }
  0x56   : > { %v759_v45 = vsel %vm739_vm7, %v754_v37, %v758_v36  ;;  %v915_v19 = vrot.slane %v3360_v15, 3  ;;  %v764_v34 = vshll.u32 %v2084_v38, 16  ;;  %v2085_v31 = vcombine.low %v710_v41, %v710_v41  ;;  %v2528_v15 = vld [vmem:[%s3349_s1 + $0x80] sm:$0xff]  }
  0x57   : > { %2310 = vmatmul.mubr.msk.bf16.vlgmr.msra.gmra.mrb[0].mxu1 %vm366_vm0, %v759_v45  ;;  %v768_v44 = vshrl.u32 %v2084_v38, 16  ;;  %v3361_v16 = vshll.u32 %v2865_v50, 16  ;;  %v1427_v8 = vsel %vm467_vm8, %v1417_v17, %v1426_v12  ;;  %v1431_v59 = vrot.slane %v1429_v51, 3  ;;  %v1656_v38 = vld [vmem:[%s2748_s6 + $0xc] sm:$0xf] }
  0x58   : > { %2318 = vmatpush3.bf16.msra.mxu1 %v3083_v14  ;;  %v1434_v47 = vrot.slane %v1432_v58, 4  ;;  %v3362_v52 = vshrl.u32 %v2873_v48, 16  ;;  %v2524_v14 = vld [vmem:[%s3349_s1 + $0x78] sm:$0xff]   ;;  %v766_v36 = vrot.slane %v764_v34, 1  ;;  %v772_v33 = vshll.u32 %v2085_v31, 16 }
  0x59   : > { %v918_v43 = vrot.slane %v3361_v16, 4  ;;  %2319 = vmatprep.subr.bf16.mxu1 %v2525_v39  ;;  %v3363_v50 = vshll.u32 %v2873_v48, 16  ;;  %v930_v17 = vshrl.u32 %v3018_v25, 16  ;;  %v933_v37 = vshll.u32 %v3018_v25, 16  ;;  %v1659_v58 = vld [vmem:[%s2748_s6 + $0x18] sm:$0xf] }
  0x5a   : > { %v923_v11 = vrot.slane %v3362_v52, 3  ;;  %2358 = vmatmul.mubr.msk.bf16.vlgmr.msra.gmra.mrb[0].mxu0 %vm366_vm0, %v1418_v42  ;;  %v767_v5 = vsel %vm739_vm7, %v762_v18, %v766_v36  ;;  %v770_v2 = vor.u32 %v768_v44, %v766_v36  ;;  %v774_v24 = vrot.slane %v772_v33, 1  ;;  %v1658_v42 = vld [vmem:[%s2748_s6 + $0x14] sm:$0xf]  ;;  %v1660_v52 = vld [vmem:[%s2748_s6 + $0x1c] sm:$0xf] }
  0x5b   : > { %v919_v9 = vor.u32 %v918_v43, %v915_v19  ;;  %v926_v4 = vrot.slane %v3363_v50, 4  ;;  %v1666_v41 = vmul.bf16 %v1657_v23, %v2845_v35  ;;  %2366 = vmatpush3.bf16.msra.mxu0 %v3101_v57  ;;  %2361 = vmatprep.mubr.msk.bf16.mxu0 %vm366_vm0, %v1427_v8  ;;  %v1435_v48 = vor.u32 %v1434_v47, %v1431_v59 }
  0x5c   : > { %2320 = vmatpush3.bf16.msra.mxu1 %v2525_v39  ;;  %v932_v45 = vrot.slane %v930_v17, 3  ;;  %v935_v25 = vrot.slane %v933_v37, 4  ;;  %2367 = vmatprep.subr.bf16.mxu0 %v2524_v14  ;;  %v775_v39 = vsel %vm739_vm7, %v770_v2, %v774_v24  ;;  %v3364_v57 = vmul.bf16 %v2997_v22, %v3010_v28 }
  0x5d   : > { %v927_v26 = vor.u32 %v926_v4, %v923_v11  ;;  %2313 = vmatprep.mubr.msk.bf16.mxu1 %vm366_vm0, %v767_v5  ;;  %2389 = vmatprep.subr.bf16.mxu1 %v2714_v1  ;;  %v883_v51 = vmul.bf16 %v3179_v29, %v3035_v53  ;;  %v1665_v62 = vmul.bf16 %v1656_v38, %v2831_v10  ;;  %v1661_v11 = vld [vmem:[%s2748_s6 + $0x20] sm:$0xf]  ;;  %v2531_v5 = vld [vmem:[%s3349_s1 + $0x88] sm:$0xff]  }
  0x5e   : > { %v2099_v19 = vcombine.low %v3364_v57, %v882_v27  ;;  %v936_v18 = vor.u32 %v935_v25, %v932_v45  ;;  %v1667_v44 = vmul.bf16 %v1658_v42, %v2862_v49  ;;  %v1436_v28 = vsel %vm467_vm8, %v1426_v12, %v1435_v48 }
  0x5f   : > { %v928_v35 = vsel %vm467_vm8, %v919_v9, %v927_v26  ;;  %2314 = vmatmul.mubr.msk.bf16.gmra.mrb[4].mxu1 %vm366_vm0, %v775_v39  ;;  %2368 = vmatpush3.bf16.msra.mxu0 %v2524_v14  ;;  %v2155_v27 = vcombine.low %v2794_v46, %v2812_v54  ;;  %v2100_v16 = vcombine.low %v883_v51, %v883_v51  ;;  %v1663_v9 = vld [vmem:[%s2748_s6 + $0x28] sm:$0xf] }
  0x60   : > { %2321 = vmatprep.mubr.msk.bf16.mxu1 %vm366_vm0, %v928_v35  ;;  %v939_v34 = vshrl.u32 %v2099_v19, 16  ;;  %v942_v31 = vshll.u32 %v2099_v19, 16  ;;  %2377 = vmatprep.subr.bf16.mxu0 %v2528_v15  ;;  %v1668_v8 = vmul.bf16 %v1659_v58, %v2885_v56  ;;  %v2169_v59 = vcombine.low %v1665_v62, %v1666_v41  ;;  %v1662_v56 = vld [vmem:[%s2748_s6 + $0x24] sm:$0xf]  ;;  %v1664_v41 = vld [vmem:[%s2748_s6 + $0x2c] sm:$0x1] }
  0x61   : > { %v948_v47 = vshrl.u32 %v2100_v16, 16  ;;  %v951_v10 = vshll.u32 %v2100_v16, 16  ;;  %v937_v49 = vsel %vm467_vm8, %v927_v26, %v936_v18  ;;  %v1669_v33 = vmul.bf16 %v1660_v52, %v2966_v63  ;;  %s3258_s6 = sand.u32 1, %s2620_s16  }
  0x62   : > { %v941_v53 = vrot.slane %v939_v34, 3  ;;  %v944_v43 = vrot.slane %v942_v31, 4  ;;  %2362 = vmatmul.mubr.msk.bf16.gmra.mrb[4].mxu0 %vm366_vm0, %v1436_v28  ;;  %v2170_v14 = vcombine.low %v1667_v44, %v1668_v8  ;;  %v1705_v36 = vshll.u32 %v2169_v59, 16  ;;  %s2041_s9 = sshll.u32 %s3258_s6, 5  ;;  %s1912_s22 = scalar_lea.sflag [#allocation3], %s3258_s6 }
  0x63   : > { %2369 = vmatprep.mubr.msk.bf16.mxu0 %vm366_vm0, %v2155_v27  ;;  %v950_v46 = vrot.slane %v948_v47, 3  ;;  %v953_v54 = vrot.slane %v951_v10, 4  ;;  %v2156_v50 = vcombine.low %v2821_v61, %v2982_v20  ;;  %v1670_v17 = vmul.bf16 %v1661_v11, %v2976_v32  ;;  %s3261_s10 = scalar_lea.vmem [#allocation2], %s2041_s9 }
  0x64   : > { %v945_v12 = vor.u32 %v944_v43, %v941_v53  ;;  %v2157_v37 = vcombine.low %v2990_v60, %v3003_v7  ;;  %v1671_v63 = vmul.bf16 %v1662_v56, %v3088_v6  ;;  %v1703_v61 = vshrl.u32 %v2169_v59, 16  ;;  %s1930_s11 = sshll.u32 %s3261_s10, 4  ;;  %s3272_s11 = int_to_ptr.vmem [resolvable:$true] %s1930_s11 }
  0x65   : > { %v954_v4 = vor.u32 %v953_v54, %v950_v46  ;;  %v1707_v20 = vrot.slane %v1705_v36, 1  ;;  %v1672_v2 = vmul.bf16 %v1663_v9, %v3093_v21  ;;  %v2171_v60 = vcombine.low %v1669_v33, %v1670_v17  ;;  %s2534_s23 = scalar_lea.vmem %s3272_s11, 512  ;;  %p2541_p0 = scmp.lt.s32.totalorder %s3272_s11, %s2539_s28 }
  0x66   : > { %v946_v23 = vsel %vm467_vm8, %v936_v18, %v945_v12  ;;  %v2113_v7 = vcombine.low %v2935_v30, %v2997_v22  ;;  %v2158_v21 = vcombine.low %v3038_v13, %v3133_v55  ;;  %v1673_v30 = vmul.bf16 %v1664_v41, %v3078_v0  ;;  %p2535_p11 = scmp.ne.s32.totalorder %s3272_s11, %s2534_s23  ;;  %p2542_p1 = scmp.lt.s32.totalorder %s2540_s29, %s2534_s23 }
  0x67   : > { %2322 = vmatmul.mubr.msk.bf16.vlgmr.msra.gmra.mrb[0].mxu1 %vm366_vm0, %v937_v49  ;;  %v955_v32 = vsel %vm467_vm8, %v945_v12, %v954_v4  ;;  %v1708_v6 = vor.u32 %v1707_v20, %v1703_v61  ;;  %v2172_v26 = vcombine.low %v1671_v63, %v1672_v2  ;;  %v1718_v48 = vshll.u32 %v2171_v60, 16 }
  0x68   : > { %2391 = vmatpush3.bf16.msra.mxu1 %v2714_v1  ;;  %2325 = vmatprep.mubr.msk.bf16.mxu1 %vm366_vm0, %v946_v23  ;;  %v1710_v1 = vshll.u32 %v2170_v14, 16  ;;  %v1722_v45 = vshrl.u32 %v2171_v60, 16  ;;  %v2173_v39 = vcombine.low %v1673_v30, %v1673_v30  ;;  %v2114_v55 = vcombine.low %v3117_v40, %v3179_v29  ;;  %p2536_p12 = pnand %p2535_p11, %p2697_p5  ;;  %p2543_p2 = por %p2542_p1, %p2541_p0 }
  0x69   : > { %2390 = vmatprep.subr.bf16.mxu1 %v2724_v3  ;;  %v1726_v25 = vshll.u32 %v2172_v26, 16  ;;  %v1720_v38 = vrot.slane %v1718_v48, 1  ;;  %v1730_v0 = vshrl.u32 %v2172_v26, 16 }
  0x6a   : > { %2370 = vmatmul.mubr.msk.bf16.vlgmr.msra.gmra.mrb[0].mxu0 %vm366_vm0, %v2156_v50  ;;  %v1712_v24 = vrot.slane %v1710_v1, 1  ;;  %v1734_v57 = vshll.u32 %v2173_v39, 16  ;;  %p2537_p13 = pneg %p2536_p12 }
  0x6b   : > { %2378 = vmatpush3.bf16.msra.mxu0 %v2528_v15  ;;  %2373 = vmatprep.mubr.msk.bf16.mxu0 %vm366_vm0, %v2157_v37  ;;  %v1724_v15 = vor.u32 %v1722_v45, %v1720_v38  ;;  %v1728_v13 = vrot.slane %v1726_v25, 1 }
  0x6c   : > { %2392 = vmatpush3.bf16.msra.mxu1 %v2724_v3  ;;  %2379 = vmatprep.subr.bf16.mxu0 %v2531_v5  ;;  %v1714_v3 = vshrl.u32 %v2170_v14, 16  ;;  %v1713_v22 = vsel %vm739_vm7, %v1708_v6, %v1712_v24  ;;  %v1736_v58 = vrot.slane %v1734_v57, 1  ;;  %p2544_p3 = pnand %p2543_p2, %p2537_p13 }
  0x6d   : > { %v1729_v19 = vsel %vm739_vm7, %v1724_v15, %v1728_v13  ;;  %v1732_v51 = vor.u32 %v1730_v0, %v1728_v13 }
  0x6e   : > { %v1716_v42 = vor.u32 %v1714_v3, %v1712_v24 }
  0x6f   : > { %2326 = vmatmul.mubr.msk.bf16.gmra.mrb[4].mxu1 %vm366_vm0, %v955_v32  ;;  %2380 = vmatpush3.bf16.msra.mxu0 %v2531_v5  ;;  %v1737_v18 = vsel %vm739_vm7, %v1732_v51, %v1736_v58 }
  0x70   : > { %2337 = vmatprep.mubr.msk.bf16.mxu1 %vm366_vm0, %v2113_v7  ;;  %v1721_v35 = vsel %vm739_vm7, %v1716_v42, %v1720_v38 }
  0x72   : > { %2374 = vmatmul.mubr.msk.bf16.gmra.mrb[4].mxu0 %vm366_vm0, %v2158_v21 }
  0x73   : > { %2381 = vmatprep.mubr.msk.bf16.mxu0 %vm366_vm0, %v1713_v22 }
  0x7a   : > { %2382 = vmatmul.mubr.msk.bf16.vlgmr.msra.gmra.mrb[0].mxu0 %vm366_vm0, %v1721_v35 }
  0x7b   : > { %2338 = vmatmul.mubr.msk.bf16.vlgmr.msra.gmra.mrb[4].mxu1 %vm366_vm0, %v2114_v55  ;;  %2385 = vmatprep.mubr.msk.bf16.mxu0 %vm366_vm0, %v1729_v19 }
  0x82   : > { %2386 = vmatmul.mubr.msk.bf16.gmra.mrb[4].mxu0 %vm366_vm0, %v1737_v18 }
 0x13a   : > { %v2323_v40 = vpop.f32.mrb[0].mxu1 }
 0x13b   : > { %v1014_v29 = vpop.f32.mrb[1].mxu1 }
 0x13c   : > { %v2324_v34 = vpop.f32.mrb[2].mxu1 }
 0x13d   : > { %v1017_v31 = vpop.f32.mrb[3].mxu1 }
 0x14d   : > { %v2383_v44 = vpop.f32.mrb[0].mxu0 }
 0x14e   : > { %v2339_v62 = vpop.f32.mrb[4].mxu1  ;;  %v2393_v27 = vadd.f32 %v2383_v44, %v2323_v40  ;;  %v1796_v16 = vpop.f32.mrb[1].mxu0 }
 0x14f   : > { %v1152_v28 = vpop.f32.mrb[5].mxu1  ;;  %v2394_v43 = vadd.f32 %v1796_v16, %v1014_v29  ;;  %v2384_v8 = vpop.f32.mrb[2].mxu0 }
 0x150   : > { %v2340_v53 = vpop.f32.mrb[6].mxu1  ;;  %v2395_v47 = vadd.f32 %v2384_v8, %v2324_v34  ;;  %v1799_v10 = vpop.f32.mrb[3].mxu0  ;;  %v1891_v23 = vmul.f32 %v2393_v27, %v2393_v27 }
 0x151   : > { %v1155_v59 = vpop.f32.mrb[7].mxu1  ;;  %v2396_v52 = vadd.f32 %v1799_v10, %v1017_v31  ;;  %v1889_v12 = vmul.f32 %v2394_v43, %v2394_v43 }
 0x152   : > { %v2212_v49 = vpack.c.bf16 %v2395_v47, %v2393_v27  ;;  %v1892_v50 = vmul.f32 %v2395_v47, %v2395_v47 }
 0x153   : > { %v2207_v46 = vpack.c.bf16 %v2396_v52, %v2394_v43  ;;  %v1875_v54 = vadd.f32 %v2396_v52, %v2394_v43  ;;  %v1890_v11 = vmul.f32 %v2396_v52, %v2396_v52 }
 0x154   : > { %2224 = vst [vmem:[%s3261_s10 + $0x8] sm:$0xff] %v2212_v49  }
 0x155   : > { %2208 = vst [vmem:[%s3261_s10] sm:$0xff] %v2207_v46   ;;  %v1876_v14 = vadd.f32 %v2393_v27, %v1875_v54  ;;  %v1897_v36 = vadd.f32 %v1890_v11, %v1889_v12  ;;  %v2387_v56 = vpop.f32.mrb[4].mxu0 }
 0x156   : > { %v2397_v33 = vadd.f32 %v2387_v56, %v2339_v62  ;;  %v1812_v9 = vpop.f32.mrb[5].mxu0 }
 0x157   : > { %v1898_v4 = vadd.f32 %v1897_v36, %v1891_v23  ;;  %v2398_v17 = vadd.f32 %v1812_v9, %v1152_v28  ;;  %v1877_v37 = vadd.f32 %v2395_v47, %v1876_v14  ;;  %v2388_v63 = vpop.f32.mrb[6].mxu0 }
 0x158   : > { %v2399_v5 = vadd.f32 %v2388_v63, %v2340_v53  ;;  %v1815_v61 = vpop.f32.mrb[7].mxu0  ;;  %v1895_v41 = vmul.f32 %v2397_v33, %v2397_v33 }
 0x159   : > { %v1878_v20 = vadd.f32 %v2398_v17, %v1877_v37  ;;  %v1893_v1 = vmul.f32 %v2398_v17, %v2398_v17  ;;  %v1899_v2 = vadd.f32 %v1898_v4, %v1892_v50  ;;  %v2400_v32 = vadd.f32 %v1815_v61, %v1155_v59 }
 0x15a   : > { %v2222_v60 = vpack.c.bf16 %v2399_v5, %v2397_v33 }
 0x15b   : > { %v1900_v7 = vadd.f32 %v1899_v2, %v1893_v1  ;;  %v2217_v6 = vpack.c.bf16 %v2400_v32, %v2398_v17  ;;  %v1879_v24 = vadd.f32 %v2400_v32, %v1878_v20  ;;  %v1894_v26 = vmul.f32 %v2400_v32, %v2400_v32 }
 0x15c   : > { %2226 = vst [vmem:[%s3261_s10 + $0x18] sm:$0xff] %v2222_v60  }
 0x15d   : > { %2225 = vst [vmem:[%s3261_s10 + $0x10] sm:$0xff] %v2217_v6   ;;  %v1880_v21 = vadd.f32 %v2397_v33, %v1879_v24  ;;  %v1901_v48 = vadd.f32 %v1900_v7, %v1894_v26 }
 0x15e   : > { %2547 = shalt.err (!%p2544_p3)
}
 0x15f   : > { %s2548_s30 = scalar_lea.hbm %s3270_s20, 512  ;;  %s2552_s8 = scalar_lea.hbm %s3351_s3, 1024 }
 0x160   : > { %p2549_p4 = scmp.ne.s32.totalorder %s3270_s20, %s2548_s30  ;;  %p2553_p9 = scmp.lt.u32.totalorder %s3270_s20, %s3351_s3 }
 0x161   : > { %p2554_p10 = scmp.lt.u32.totalorder %s2552_s8, %s2548_s30  ;;  %p2556_p12 = scmp.lt.u32.totalorder %s2548_s30, %s3270_s20 }
 0x162   : > { %p2550_p7 = pnand %p2549_p4, %p2697_p5 }
 0x163   : > { %p2555_p11 = por %p2554_p10, %p2553_p9 }
 0x164   : > { %p2551_p8 = pneg %p2550_p7 }
 0x165   : > { %p2557_p13 = por %p2556_p12, %p2555_p11 }
 0x167   : > { %p2558_p0 = pnand %p2557_p13, %p2551_p8 }
 0x169   : > { %2561 = shalt.err (!%p2558_p0)
}
 0x16a   : > { %s2631_s12 = smov 64   ;;  %s2632_s13 = smov 4   ;;  %v1896_v3 = vmul.f32 %v2399_v5, %v2399_v5  ;;  %v1881_v30 = vadd.f32 %v2399_v5, %v1880_v21  ;;  %v1902_v22 = vadd.f32 %v1901_v48, %v1895_v41 }
 0x16b   : > { %2458 = dma.vmem_to_hbm [thread:$0]  (%p2697_p5), %s3272_s11, 512, %s3270_s20, %s1912_s22, %s2631_s12, %s2631_s12, %s2632_s13  }
 0x16c   : > { %v1882_v45 = vrot.slane %v1881_v30, 4  ;;  %v1903_v25 = vadd.f32 %v1902_v22, %v1896_v3  ;;  %s2042_s14 = sshll.u32 %s3258_s6, 1  ;;  %s2192_s23 = sshll.u32 %s2680_s19, 5 }
 0x16d   : > { %s201_s27 = scalar_lea.vmem [#allocation4], %s2042_s14  ;;  %s3305_s22 = scalar_lea.hbm %s3352_s4, %s2192_s23 }
 0x16e   : > { %v1883_v38 = vadd.f32 %v1882_v45, %v1881_v30  ;;  %v1904_v42 = vrot.slane %v1903_v25, 4  ;;  %s1946_s28 = sshll.u32 %s201_s27, 4  ;;  %s1917_s29 = scalar_lea.sflag [#allocation5], %s3258_s6  ;;  %s3307_s28 = int_to_ptr.vmem [resolvable:$true] %s1946_s28 }
 0x16f   : > { %s2562_s30 = scalar_lea.vmem %s3307_s28, 32  ;;  %s2633_s19 = smov [#allocation4]  }
 0x170   : > { %v1884_v39 = vrot.slane %v1883_v38, 2  ;;  %v1905_v15 = vadd.f32 %v1904_v42, %v1903_v25  ;;  %p2563_p1 = scmp.ne.s32.totalorder %s3307_s28, %s2562_s30  ;;  %s2566_s5 = sshll.u32 %s2633_s19, 4  ;;  %s2567_s5 = int_to_ptr.vmem [resolvable:$false] %s2566_s5 }
 0x171   : > { %s2568_s7 = scalar_lea.vmem %s2567_s5, 64  ;;  %p2569_p4 = scmp.lt.s32.totalorder %s3307_s28, %s2567_s5 }
 0x172   : > { %v1885_v13 = vadd.f32 %v1884_v39, %v1883_v38  ;;  %v1906_v55 = vrot.slane %v1905_v15, 2  ;;  %p2564_p2 = pnand %p2563_p1, %p2697_p5  ;;  %p2570_p7 = scmp.lt.s32.totalorder %s2568_s7, %s2562_s30 }
 0x174   : > { %v1886_v35 = vrot.slane %v1885_v13, 1  ;;  %v1907_v0 = vadd.f32 %v1906_v55, %v1905_v15  ;;  %p2565_p3 = pneg %p2564_p2  ;;  %p2571_p8 = por %p2570_p7, %p2569_p4 }
 0x176   : > { %v1887_v57 = vadd.f32 %v1886_v35, %v1885_v13  ;;  %v1908_v19 = vrot.slane %v1907_v0, 1  ;;  %p2572_p9 = pnand %p2571_p8, %p2565_p3 }
 0x178   : > { %1888 = vst [vmem:[%s201_s27] sm:$0x1] %v1887_v57  ;;  %v1909_v51 = vadd.f32 %v1908_v19, %v1907_v0 }
 0x17a   : > { %1910 = vst [vmem:[%s201_s27 + $0x1] sm:$0x1] %v1909_v51 }
 0x17b   : > { %2575 = shalt.err (!%p2572_p9)
}
 0x17c   : > { %s2576_s6 = scalar_lea.hbm %s3305_s22, 32  ;;  %s2580_s10 = scalar_lea.hbm %s3352_s4, 64 }
 0x17d   : > { %p2577_p10 = scmp.ne.s32.totalorder %s3305_s22, %s2576_s6  ;;  %p2581_p13 = scmp.lt.u32.totalorder %s3305_s22, %s3352_s4 }
 0x17e   : > { %p2582_p0 = scmp.lt.u32.totalorder %s2580_s10, %s2576_s6  ;;  %p2584_p2 = scmp.lt.u32.totalorder %s2576_s6, %s3305_s22 }
 0x17f   : > { %p2578_p11 = pnand %p2577_p10, %p2697_p5 }
 0x180   : > { %p2583_p1 = por %p2582_p0, %p2581_p13 }
 0x181   : > { %p2579_p12 = pneg %p2578_p11 }
 0x182   : > { %p2585_p3 = por %p2584_p2, %p2583_p1 }
 0x184   : > { %p2586_p4 = pnand %p2585_p3, %p2579_p12 }
 0x186   : > { %2589 = shalt.err (!%p2586_p4)
}
 0x187   : > { %2459 = dma.vmem_to_hbm [thread:$0]  (%p2697_p5), %s3307_s28, 32, %s3305_s22, %s1917_s29  }
 0x188 PF: > { %p2469_p7 = scmp.ge.s32.totalorder %s2628_s18, 2  ;;  %s1958_s14 = sand.u32 1, %s2616_s15  }
 0x189   : > { %s1959_s23 = scalar_lea.sflag [#allocation3], %s1958_s14 }
 0x18a   : > { %p2463_p8 = pnand %p2469_p7, %p2701_p6 }
 0x18c   : > { %2607 = dma.done.wait (!%p2463_p8), %s1959_s23, 512  }
 0x18d   : > { %2609 = vsyncadd (!%p2463_p8), %s1959_s23, 4294966784  ;;  %s1968_s27 = scalar_lea.sflag [#allocation5], %s1958_s14 }
 0x18e   : > { %2611 = dma.done.wait (!%p2463_p8), %s1968_s27, 32  }
 0x18f   : > { %2613 = vsyncadd (!%p2463_p8), %s1968_s27, 4294967264  ;;  %p18_p5 = scmp.ge.s32.totalorder %s2684_s21, 4   ;;  %s3365_s15 = smov %s2620_s16 }
 0x190   : > { %s3366_s16 = smov %s2624_s17  ;;  %s3367_s17 = smov %s2695_s24 }
 0x191   : > { %s3368_s18 = smov %s2684_s21  ;;  %20 = sbr.rel (!%p18_p5) target bundleno = 5 (0x5), region = 93 }
 0x198   :  { %1973 = vsyncpa [#allocation3], 1 }
 0x199   :  { %1975 = vsyncpa [#allocation3 + $0x1], 1 }
 0x19a   :  { %1976 = vsyncpa [#allocation5], 1 }
 0x19b   :  { %1978 = vsyncpa [#allocation5 + $0x1], 1 }

</bundles_post_ra>
